<compile_context>
chip_gen: v7x
topology: tpu7x:2x2x1
jax: 0.10.0
libtpu: 0.0.40
codegen_flags: <defaults>
</compile_context>

<pallas_src>
import jax
import jax.numpy as jnp
from jax import lax
from jax.experimental import pallas as pl
from jax.experimental.pallas import tpu as pltpu

EPS = 1e-5
_LANE = 128
_MAX_IN_BLOCK_BYTES = 8 * 1024 * 1024   # per-block input DMA footprint ceiling


# --------------------------------------------------------------------------- #
# Hardware queries / heuristics
# --------------------------------------------------------------------------- #
def _vmem_capacity_bytes():
    """Physical VMEM per TensorCore with a chip-aware fallback."""
    try:
        cap = int(pltpu.get_tpu_info().vmem_capacity_bytes)
        if cap > 0:
            return cap
    except Exception:
        pass
    try:
        kind = jax.devices()[0].device_kind.lower()
    except Exception:
        kind = ""
    # v7x has 64 MiB per TensorCore; v5e / v6e have 128 MiB.
    return 64 * 1024 * 1024 if "7" in kind else 128 * 1024 * 1024


def _use_low_precision_normalize(dtype):
    """Normalize in bf16 only on chips with a bf16 VALU (v6e / v7x, not <=v5)."""
    if jnp.dtype(dtype) != jnp.dtype(jnp.bfloat16):
        return False
    try:
        kind = jax.devices()[0].device_kind.lower()
    except Exception:
        return False
    return not any(v in kind for v in ("v2", "v3", "v4", "v5"))


def _sublane_multiple(dtype):
    itemsize = jnp.dtype(dtype).itemsize
    if itemsize >= 4:
        return 8
    if itemsize == 2:
        return 16
    return 32


def _choose_tc(B, CG, S, itemsize, m, budget):
    """Channel tile for the single-sweep path, or None if even the smallest
    legal tile cannot fit the VMEM budget (=> use the S-chunked fallback)."""
    in_bytes_per_c = B * S * itemsize
    # double-buffered input + output blocks + in-kernel f32 temporaries
    vmem_bytes_per_c = 4 * in_bytes_per_c + 24 * S
    if CG <= m:
        return CG if vmem_bytes_per_c * CG <= budget else None
    tc_vmem = budget // vmem_bytes_per_c
    if tc_vmem < m:
        return None
    tc_mem = max(m, _MAX_IN_BLOCK_BYTES // in_bytes_per_c)  # ~2-8 MiB DMA blocks
    tc_hi = min(tc_vmem, tc_mem, CG)
    tc_hi = max(m, (tc_hi // m) * m)
    # Prefer: >=4 grid steps (when the channel count allows), an even step count
    # (v7x shards the "parallel" axis across 2 TensorCores), balanced blocks,
    # then the largest tile (bigger DMAs).
    min_steps = min(4, pl.cdiv(CG, m))
    best_key, best_t = None, m
    for t in range(tc_hi, m - 1, -m):
        steps = pl.cdiv(CG, t)
        key = (steps >= min_steps, steps % 2 == 0, CG % t == 0, t)
        if best_key is None or key > best_key:
            best_key, best_t = key, t
    return best_t


def _choose_chunked_tiles(B, CG, S, itemsize, m, budget):
    """Tiles for the S-chunked two-pass fallback."""
    tc = min(CG, m)
    per_lane = 4 * B * tc * itemsize + 24 * tc    # dbl-buffered IO + f32 temps
    ts_hi = min(budget // max(1, per_lane),
                _MAX_IN_BLOCK_BYTES // max(1, B * tc * itemsize),
                S)
    ts = max(_LANE, (ts_hi // _LANE) * _LANE)
    ts = min(ts, S)
    return tc, ts


# --------------------------------------------------------------------------- #
# Kernels
# --------------------------------------------------------------------------- #
def _make_direct_kernel(compute_dtype):
    """Single-sweep kernel: one channel-tile block holds the full (B, S) slab."""

    def kernel(x_ref, gb_ref, o_ref):
        B, tc, S = x_ref.shape
        inv_n = 1.0 / float(B * S)

        # ---- stats: batch-axis adds first (VPU), one lane reduce per stat (XLU)
        x0 = x_ref[0].astype(jnp.float32)                          # (tc, S)
        # cheap per-channel pivot -> avoids E[x^2]-E[x]^2 cancellation
        pivot = jnp.sum(x0, axis=1, keepdims=True) * (1.0 / S)     # (tc, 1)
        pivot_b = jnp.broadcast_to(pivot, (tc, S))                 # hoisted
        d = x0 - pivot_b
        s_acc = d
        ss_acc = d * d
        for b in range(1, B):
            d = x_ref[b].astype(jnp.float32) - pivot_b
            s_acc = s_acc + d
            ss_acc = ss_acc + d * d
        s = jnp.sum(s_acc, axis=1, keepdims=True)                  # (tc, 1)
        ss = jnp.sum(ss_acc, axis=1, keepdims=True)                # (tc, 1)

        dmean = s * inv_n
        var = jnp.maximum(ss * inv_n - dmean * dmean, 0.0)         # biased var
        inv_std = lax.rsqrt(var + EPS)

        gb = gb_ref[...].astype(jnp.float32)                       # (tc, 2)
        gamma = gb[:, 0:1]
        beta = gb[:, 1:2]
        scale = inv_std * gamma
        shift = beta - (pivot + dmean) * scale

        # ---- normalize: per-batch-row, re-reading the VMEM block (no full f32
        # copy stays live); optionally in bf16 on chips with a bf16 VALU.
        scale_b = jnp.broadcast_to(scale.astype(compute_dtype), (tc, S))
        shift_b = jnp.broadcast_to(shift.astype(compute_dtype), (tc, S))
        for b in range(B):
            o_ref[b] = (x_ref[b].astype(compute_dtype) * scale_b
                        + shift_b).astype(o_ref.dtype)

    return kernel


def _make_stats_kernel(total_n, total_s):
    """Pass 1 of the chunked fallback: accumulate per-channel sum / sumsq over
    S chunks (resident scratch), finalize scale/shift at the last chunk."""

    def kernel(x_ref, gb_ref, scale_ref, shift_ref, sum_ref, ssq_ref, piv_ref):
        B, tc, ts = x_ref.shape
        s_idx = pl.program_id(1)
        n_s = pl.num_programs(1)

        @pl.when(s_idx == 0)
        def _init():
            x0 = x_ref[0].astype(jnp.float32)
            piv_ref[...] = jnp.sum(x0, axis=1, keepdims=True) * (1.0 / ts)
            sum_ref[...] = jnp.zeros_like(sum_ref)
            ssq_ref[...] = jnp.zeros_like(ssq_ref)

        pivot_b = jnp.broadcast_to(piv_ref[...], (tc, ts))
        d = x_ref[0].astype(jnp.float32) - pivot_b
        s_acc = d
        ss_acc = d * d
        for b in range(1, B):
            d = x_ref[b].astype(jnp.float32) - pivot_b
            s_acc = s_acc + d
            ss_acc = ss_acc + d * d

        # Mask lanes past the end of S in the (possibly partial) last chunk.
        valid = total_s - s_idx * ts
        lane = lax.broadcasted_iota(jnp.int32, (tc, ts), 1)
        keep = lane < valid
        s_acc = jnp.where(keep, s_acc, 0.0)
        ss_acc = jnp.where(keep, ss_acc, 0.0)

        sum_ref[...] += jnp.sum(s_acc, axis=1, keepdims=True)
        ssq_ref[...] += jnp.sum(ss_acc, axis=1, keepdims=True)

        @pl.when(s_idx == n_s - 1)
        def _finalize():
            inv_n = 1.0 / float(total_n)
            dmean = sum_ref[...] * inv_n
            var = jnp.maximum(ssq_ref[...] * inv_n - dmean * dmean, 0.0)
            inv_std = lax.rsqrt(var + EPS)
            gb = gb_ref[...].astype(jnp.float32)
            gamma = gb[:, 0:1]
            beta = gb[:, 1:2]
            scale = inv_std * gamma
            scale_ref[...] = scale
            shift_ref[...] = beta - (piv_ref[...] + dmean) * scale

    return kernel


def _make_norm_kernel(compute_dtype):
    """Pass 2 of the chunked fallback: y = x * scale + shift per chunk."""

    def kernel(x_ref, scale_ref, shift_ref, o_ref):
        B, tc, ts = x_ref.shape
        scale_b = jnp.broadcast_to(scale_ref[...].astype(compute_dtype), (tc, ts))
        shift_b = jnp.broadcast_to(shift_ref[...].astype(compute_dtype), (tc, ts))
        for b in range(B):
            o_ref[b] = (x_ref[b].astype(compute_dtype) * scale_b
                        + shift_b).astype(o_ref.dtype)

    return kernel


# --------------------------------------------------------------------------- #
# Wrapper
# --------------------------------------------------------------------------- #
def sub_spectral_norm(x, gamma, beta, spec_groups=4, *,
                      force_chunked=False, force_ts=None):
    """x: (B, C, H, W) NCHW. gamma/beta: (C*spec_groups,). Returns (B, C, H, W)."""
    B, C, H, W = x.shape
    G = spec_groups
    assert H % G == 0, f"Height {H} not divisible by spec_groups {G}"
    CG = C * G
    S = (H // G) * W

    # Free, contiguous reshapes only -- no HBM transposes.
    # TODO(synk): for S < 128, fold k adjacent channels into the lane dim
    # ((B, CG/k, k*S) with segmented stats) to avoid masked sub-128-lane stores.
    x3 = x.reshape(B, CG, S)
    gb = jnp.stack([jnp.asarray(gamma, jnp.float32),
                    jnp.asarray(beta, jnp.float32)], axis=1)        # (CG, 2)

    itemsize = jnp.dtype(x.dtype).itemsize
    m = _sublane_multiple(x.dtype)
    cap = _vmem_capacity_bytes()
    vmem_limit = min(int(cap * 3 // 4), 96 * 1024 * 1024)
    budget = int(vmem_limit * 3 // 4)            # >=25% headroom for the compiler
    cdt = jnp.bfloat16 if _use_low_precision_normalize(x.dtype) else jnp.float32

    tc = None if force_chunked else _choose_tc(B, CG, S, itemsize, m, budget)

    if tc is not None:
        # ---------------- fast single-sweep path ----------------
        out3 = pl.pallas_call(
            _make_direct_kernel(cdt),
            out_shape=jax.ShapeDtypeStruct((B, CG, S), x.dtype),
            grid_spec=pltpu.PrefetchScalarGridSpec(
                num_scalar_prefetch=0,
                grid=(pl.cdiv(CG, tc),),
                in_specs=[
                    pl.BlockSpec((B, tc, S), lambda i: (0, i, 0)),
                    pl.BlockSpec((tc, 2), lambda i: (i, 0)),
                ],
                out_specs=pl.BlockSpec((B, tc, S), lambda i: (0, i, 0)),
            ),
            input_output_aliases={0: 0},
            compiler_params=pltpu.CompilerParams(
                dimension_semantics=("parallel",),
                vmem_limit_bytes=int(vmem_limit),
            ),
        )(x3, gb)
    else:
        # ---------------- S-chunked two-pass fallback ----------------
        tc, ts = _choose_chunked_tiles(B, CG, S, itemsize, m, budget)
        if force_ts is not None:
            ts = min(int(force_ts), S)
        n_c, n_s = pl.cdiv(CG, tc), pl.cdiv(S, ts)

        scale_c, shift_c = pl.pallas_call(
            _make_stats_kernel(B * S, S),
            out_shape=(jax.ShapeDtypeStruct((CG, 1), jnp.float32),
                       jax.ShapeDtypeStruct((CG, 1), jnp.float32)),
            grid_spec=pltpu.PrefetchScalarGridSpec(
                num_scalar_prefetch=0,
                grid=(n_c, n_s),
                in_specs=[
                    pl.BlockSpec((B, tc, ts), lambda i, j: (0, i, j)),
                    pl.BlockSpec((tc, 2), lambda i, j: (i, 0)),
                ],
                out_specs=(pl.BlockSpec((tc, 1), lambda i, j: (i, 0)),
                           pl.BlockSpec((tc, 1), lambda i, j: (i, 0))),
                scratch_shapes=[pltpu.VMEM((tc, 1), jnp.float32),
                                pltpu.VMEM((tc, 1), jnp.float32),
                                pltpu.VMEM((tc, 1), jnp.float32)],
            ),
            compiler_params=pltpu.CompilerParams(
                dimension_semantics=("parallel", "arbitrary"),
                vmem_limit_bytes=int(vmem_limit),
            ),
        )(x3, gb)

        out3 = pl.pallas_call(
            _make_norm_kernel(cdt),
            out_shape=jax.ShapeDtypeStruct((B, CG, S), x.dtype),
            grid_spec=pltpu.PrefetchScalarGridSpec(
                num_scalar_prefetch=0,
                grid=(n_c, n_s),
                in_specs=[
                    pl.BlockSpec((B, tc, ts), lambda i, j: (0, i, j)),
                    pl.BlockSpec((tc, 1), lambda i, j: (i, 0)),
                    pl.BlockSpec((tc, 1), lambda i, j: (i, 0)),
                ],
                out_specs=pl.BlockSpec((B, tc, ts), lambda i, j: (0, i, j)),
            ),
            input_output_aliases={0: 0},
            compiler_params=pltpu.CompilerParams(
                dimension_semantics=("parallel", "parallel"),
                vmem_limit_bytes=int(vmem_limit),
            ),
        )(x3, scale_c, shift_c)

    return out3.reshape(B, C, H, W)


# --------------------------------------------------------------------------- #
# Pure-JAX reference (BatchNorm2d training mode on the sub-spectral view)
# --------------------------------------------------------------------------- #
def _reference(x, gamma, beta, spec_groups=4):
    B, C, H, W = x.shape
    G = spec_groups
    xr = x.reshape(B, C * G, H // G, W).astype(jnp.float32)
    mean = xr.mean(axis=(0, 2, 3), keepdims=True)
    var = ((xr - mean) ** 2).mean(axis=(0, 2, 3), keepdims=True)
    y = (xr - mean) / jnp.sqrt(var + EPS)
    y = y * gamma.reshape(1, -1, 1, 1) + beta.reshape(1, -1, 1, 1)
    return y.reshape(B, C, H, W).astype(x.dtype)


if __name__ == "__main__":
    key = jax.random.PRNGKey(0)
    k1, k2 = jax.random.split(key)
    spec_groups = 4

    # --- fast single-sweep path (2 channel-tile grid steps) ---
    B, C, H, W = 2, 4, 16, 16
    x = jax.random.normal(k1, (B, C, H, W), dtype=jnp.float32) + 0.5
    gamma = jnp.ones((C * spec_groups,), jnp.float32)   # nn.BatchNorm2d affine init
    beta = jnp.zeros((C * spec_groups,), jnp.float32)

    y_ref = _reference(x, gamma, beta, spec_groups)
    y = jax.block_until_ready(sub_spectral_norm(x, gamma, beta, spec_groups))
    assert y.shape == x.shape and y.dtype == x.dtype
    assert jnp.allclose(y, y_ref, atol=1e-4, rtol=1e-4), "fast path mismatch"

    # --- S-chunked two-pass fallback (forced; 2 chunks incl. a masked partial) ---
    B2, C2, H2, W2 = 2, 2, 8, 96
    x2 = jax.random.normal(k2, (B2, C2, H2, W2), dtype=jnp.float32) * 2.0 + 3.0
    gamma2 = jnp.linspace(0.5, 1.5, C2 * spec_groups).astype(jnp.float32)
    beta2 = jnp.linspace(-0.25, 0.25, C2 * spec_groups).astype(jnp.float32)

    y2_ref = _reference(x2, gamma2, beta2, spec_groups)
    y2 = jax.block_until_ready(
        sub_spectral_norm(x2, gamma2, beta2, spec_groups,
                          force_chunked=True, force_ts=128))
    assert jnp.allclose(y2, y2_ref, atol=1e-4, rtol=1e-4), "chunked path mismatch"

    print("KERNEL_OK")
</pallas_src>

<mosaic_0001>
module attributes {stable_mosaic.version = 11 : i64} {
  func.func @kernel(%arg0: i32, %arg1: memref<2x8x64xf32, #tpu.memory_space<vmem>>, %arg2: memref<8x2xf32, #tpu.memory_space<vmem>>, %arg3: memref<2x8x64xf32, #tpu.memory_space<vmem>>) attributes {dimension_semantics = [#tpu.dimension_semantics<parallel>], iteration_bounds = array<i64: 2>, scalar_prefetch = 0 : i64, scratch_operands = 0 : i64, tpu.core_type = #tpu.core_type<tc>, window_params = [{transform_indices = @transform_0, window_bounds = array<i64: 2, 8, 64>}, {transform_indices = @transform_1, window_bounds = array<i64: 8, 2>}, {transform_indices = @transform_2, window_bounds = array<i64: 2, 8, 64>}]} {
    %c0 = arith.constant 0 : index
    %c0_0 = arith.constant 0 : index
    %c0_1 = arith.constant 0 : index
    %0 = vector.load %arg1[%c0, %c0_0, %c0_1] : memref<2x8x64xf32, #tpu.memory_space<vmem>>, vector<1x8x64xf32>
    %1 = vector.shape_cast %0 : vector<1x8x64xf32> to vector<8x64xf32>
    %cst = arith.constant dense<0.000000e+00> : vector<8xf32>
    %2 = vector.multi_reduction <add>, %1, %cst [1] : vector<8x64xf32> to vector<8xf32>
    %3 = vector.shape_cast %2 : vector<8xf32> to vector<8x1xf32>
    %cst_2 = arith.constant 1.562500e-02 : f32
    %4 = vector.broadcast %cst_2 : f32 to vector<8x1xf32>
    %5 = arith.mulf %3, %4 : vector<8x1xf32>
    %6 = vector.shape_cast %5 : vector<8x1xf32> to vector<8x1xf32>
    %7 = vector.broadcast %6 : vector<8x1xf32> to vector<8x64xf32>
    %8 = arith.subf %1, %7 : vector<8x64xf32>
    %9 = arith.mulf %8, %8 : vector<8x64xf32>
    %c1 = arith.constant 1 : index
    %c0_3 = arith.constant 0 : index
    %c0_4 = arith.constant 0 : index
    %10 = vector.load %arg1[%c1, %c0_3, %c0_4] : memref<2x8x64xf32, #tpu.memory_space<vmem>>, vector<1x8x64xf32>
    %11 = vector.shape_cast %10 : vector<1x8x64xf32> to vector<8x64xf32>
    %12 = arith.subf %11, %7 : vector<8x64xf32>
    %13 = arith.addf %8, %12 : vector<8x64xf32>
    %14 = arith.mulf %12, %12 : vector<8x64xf32>
    %15 = arith.addf %9, %14 : vector<8x64xf32>
    %cst_5 = arith.constant dense<0.000000e+00> : vector<8xf32>
    %16 = vector.multi_reduction <add>, %13, %cst_5 [1] : vector<8x64xf32> to vector<8xf32>
    %17 = vector.shape_cast %16 : vector<8xf32> to vector<8x1xf32>
    %cst_6 = arith.constant dense<0.000000e+00> : vector<8xf32>
    %18 = vector.multi_reduction <add>, %15, %cst_6 [1] : vector<8x64xf32> to vector<8xf32>
    %19 = vector.shape_cast %18 : vector<8xf32> to vector<8x1xf32>
    %cst_7 = arith.constant 7.812500e-03 : f32
    %20 = vector.broadcast %cst_7 : f32 to vector<8x1xf32>
    %21 = arith.mulf %17, %20 : vector<8x1xf32>
    %cst_8 = arith.constant 7.812500e-03 : f32
    %22 = vector.broadcast %cst_8 : f32 to vector<8x1xf32>
    %23 = arith.mulf %19, %22 : vector<8x1xf32>
    %24 = arith.mulf %21, %21 : vector<8x1xf32>
    %25 = arith.subf %23, %24 : vector<8x1xf32>
    %cst_9 = arith.constant 0.000000e+00 : f32
    %26 = vector.broadcast %cst_9 : f32 to vector<8x1xf32>
    %27 = arith.maximumf %25, %26 : vector<8x1xf32>
    %cst_10 = arith.constant 9.99999974E-6 : f32
    %28 = vector.broadcast %cst_10 : f32 to vector<8x1xf32>
    %29 = arith.addf %27, %28 : vector<8x1xf32>
    %30 = math.rsqrt %29 : vector<8x1xf32>
    %c0_11 = arith.constant 0 : index
    %c0_12 = arith.constant 0 : index
    %31 = vector.load %arg2[%c0_11, %c0_12] : memref<8x2xf32, #tpu.memory_space<vmem>>, vector<8x2xf32>
    %32 = vector.extract_strided_slice %31 {offsets = [0, 0], sizes = [8, 1], strides = [1, 1]} : vector<8x2xf32> to vector<8x1xf32>
    %33 = vector.extract_strided_slice %31 {offsets = [0, 1], sizes = [8, 1], strides = [1, 1]} : vector<8x2xf32> to vector<8x1xf32>
    %34 = arith.mulf %30, %32 : vector<8x1xf32>
    %35 = arith.addf %5, %21 : vector<8x1xf32>
    %36 = arith.mulf %35, %34 : vector<8x1xf32>
    %37 = arith.subf %33, %36 : vector<8x1xf32>
    %38 = vector.shape_cast %34 : vector<8x1xf32> to vector<8x1xf32>
    %39 = vector.broadcast %38 : vector<8x1xf32> to vector<8x64xf32>
    %40 = vector.shape_cast %37 : vector<8x1xf32> to vector<8x1xf32>
    %41 = vector.broadcast %40 : vector<8x1xf32> to vector<8x64xf32>
    %c0_13 = arith.constant 0 : index
    %c0_14 = arith.constant 0 : index
    %c0_15 = arith.constant 0 : index
    %42 = vector.load %arg1[%c0_13, %c0_14, %c0_15] : memref<2x8x64xf32, #tpu.memory_space<vmem>>, vector<1x8x64xf32>
    %43 = vector.shape_cast %42 : vector<1x8x64xf32> to vector<8x64xf32>
    %44 = arith.mulf %43, %39 : vector<8x64xf32>
    %45 = arith.addf %44, %41 : vector<8x64xf32>
    %c0_16 = arith.constant 0 : index
    %c0_17 = arith.constant 0 : index
    %c0_18 = arith.constant 0 : index
    %46 = vector.load %arg3[%c0_16, %c0_17, %c0_18] : memref<2x8x64xf32, #tpu.memory_space<vmem>>, vector<1x8x64xf32>
    %47 = vector.shape_cast %46 : vector<1x8x64xf32> to vector<8x64xf32>
    %48 = vector.shape_cast %45 : vector<8x64xf32> to vector<1x8x64xf32>
    tpu.vector_store %arg3[%c0_16, %c0_17, %c0_18], %48 {strides = array<i32>} : memref<2x8x64xf32, #tpu.memory_space<vmem>>, vector<1x8x64xf32>,
    %c1_19 = arith.constant 1 : index
    %c0_20 = arith.constant 0 : index
    %c0_21 = arith.constant 0 : index
    %49 = vector.load %arg1[%c1_19, %c0_20, %c0_21] : memref<2x8x64xf32, #tpu.memory_space<vmem>>, vector<1x8x64xf32>
    %50 = vector.shape_cast %49 : vector<1x8x64xf32> to vector<8x64xf32>
    %51 = arith.mulf %50, %39 : vector<8x64xf32>
    %52 = arith.addf %51, %41 : vector<8x64xf32>
    %c1_22 = arith.constant 1 : index
    %c0_23 = arith.constant 0 : index
    %c0_24 = arith.constant 0 : index
    %53 = vector.load %arg3[%c1_22, %c0_23, %c0_24] : memref<2x8x64xf32, #tpu.memory_space<vmem>>, vector<1x8x64xf32>
    %54 = vector.shape_cast %53 : vector<1x8x64xf32> to vector<8x64xf32>
    %55 = vector.shape_cast %52 : vector<8x64xf32> to vector<1x8x64xf32>
    tpu.vector_store %arg3[%c1_22, %c0_23, %c0_24], %55 {strides = array<i32>} : memref<2x8x64xf32, #tpu.memory_space<vmem>>, vector<1x8x64xf32>,
    return
  }
  func.func @transform_0(%arg0: i32) -> (i32, i32, i32) {
    %c0_i32 = arith.constant 0 : i32
    %c0_i32_0 = arith.constant 0 : i32
    %c0_i32_1 = arith.constant 0 : i32
    return %c0_i32, %arg0, %c0_i32_0 : i32, i32, i32
  }
  func.func @transform_1(%arg0: i32) -> (i32, i32) {
    %c0_i32 = arith.constant 0 : i32
    %c0_i32_0 = arith.constant 0 : i32
    return %arg0, %c0_i32 : i32, i32
  }
  func.func @transform_2(%arg0: i32) -> (i32, i32, i32) {
    %c0_i32 = arith.constant 0 : i32
    %c0_i32_0 = arith.constant 0 : i32
    %c0_i32_1 = arith.constant 0 : i32
    return %c0_i32, %arg0, %c0_i32_0 : i32, i32, i32
  }
}

</mosaic_0001>

<bundles_post_ra>
// kernel: tpu_custom_call.1
= control target key start
LH: loop header
LB: loop body
LE: loop exit
PB: predicated region body
PF: predicated region fallthrough
CT: control target
= control target key end

     0   :  { %7 = vsyncpa [#allocation3], 0  ;;  %s824_s0 = inlined_call_operand.hbm [shape: f32[2,16,64], index: 0, kind: input, shape index: {}, may-alias: {0,2}]   ;;  %s825_s1 = inlined_call_operand.hbm [shape: f32[16,2], index: 1, kind: input, shape index: {}]   ;;  %s826_s2 = inlined_call_operand.hbm [shape: f32[2,16,64], index: 2, kind: output, shape index: {}, may-alias: {0,2}]  }
   0x1   :  { %9 = vsyncpa [#allocation3 + $0x1], 0 }
   0x2   :  { %10 = vsyncpa [#allocation6], 0 }
   0x3   :  { %12 = vsyncpa [#allocation6 + $0x1], 0 }
   0x4   :  { %13 = vsyncpa [#allocation4], 0 }
   0x5   :  { %15 = vsyncpa [#allocation4 + $0x1], 0  ;;  %s603_s9 = smov 0   ;;  %s605_s10 = smov 0  }
   0x6   :  { %s607_s11 = smov 0   ;;  %s609_s12 = smov 0  }
   0x7 LB: > { %s624_s13 = sadd.s32 4294967295, %s574_s12   ;;  %s361_s14 = sadd.s32 4294967294, %s574_s12   ;;  %s574_s12 = sphi %s609_s12, %s844_s12   ;;  %s570_s11 = sphi %s607_s11, %s843_s11   ;;  %s566_s10 = sphi %s605_s10, %s842_s10   ;;  %s562_s9 = sphi %s603_s9, %s841_s9  }
   0x8   : > { %s628_s15 = sadd.s32 1, %s574_s12   ;;  %s28_s16 = sadd.s32 1, %s570_s11 }
   0x9   : > { %s25_s17 = ssub.s32 %s574_s12, %s628_s15  ;;  %p35_p0 = scmp.ne.s32.totalorder %s570_s11, %s566_s10 }
   0xa   : > { %p26_p1 = scmp.eq.s32.totalorder %s25_s17, 0  ;;  %p36_p2 = scmp.eq.s32.totalorder %s574_s12, 0 }
   0xb   : > { %p41_p3 = scmp.ne.s32.totalorder %s566_s10, %s562_s9  ;;  %p42_p4 = scmp.eq.s32.totalorder %s624_s13, 0 }
   0xc   : > { %s640_s18 = scalar_select %p26_p1, %s570_s11, %s28_s16  }
   0xd   : > { %p642_p5 = por %p36_p2, %p35_p0  ;;  %p646_p6 = por %p42_p4, %p41_p3 }
   0xe   : > { %p91_p7 = scmp.eq.s32.totalorder %s624_s13, 1  ;;  %p97_p8 = scmp.eq.s32.totalorder %s361_s14, 1 }
   0xf   : > { %s830_s20 = scalar_select %p646_p6, 1, 0 }
  0x10   : > { %p396_p10 = scmp.lt.s32.totalorder %s574_s12, 2  ;;  %p653_p11 = por %p91_p7, %p35_p0 }
  0x11   : > { %p657_p12 = por %p97_p8, %p41_p3  ;;  %s662_s23 = sand.u32 1, %s570_s11  }
  0x12   : > { %s831_s21 = scalar_select %p653_p11, 1, 0 }
  0x13   : > { %s832_s22 = scalar_select %p657_p12, 1, 0 }
  0x14   : > { %s365_s24 = sshll.u32 %s574_s12, 7  ;;  %s364_s25 = sshll.u32 %s662_s23, 4 }
  0x15   : > { %s671_s28 = scalar_lea.hbm %s824_s0, %s365_s24  ;;  %s121_s29 = scalar_lea.vmem [#allocation2], %s364_s25 }
  0x16   : > { %s127_s30 = sshll.u32 %s121_s29, 4  ;;  %p675_p13 = pnand %p396_p10, %p642_p5  ;;  %s679_s30 = int_to_ptr.vmem [resolvable:$true] %s127_s30 }
  0x17   : > { %s118_s4 = scalar_lea.sflag [#allocation3], %s662_s23  ;;  %s444_s5 = scalar_lea.hbm %s671_s28, 256 }
  0x18   : > { %p445_p1 = scmp.ne.s32.totalorder %s671_s28, %s444_s5  ;;  %p446_p2 = pneg %p675_p13 }
  0x19   : > { %s449_s8 = scalar_lea.hbm %s824_s0, 512  ;;  %p450_p5 = scmp.lt.u32.totalorder %s671_s28, %s824_s0 }
  0x1a   : > { %p447_p3 = pnand %p446_p2, %p445_p1  ;;  %p451_p7 = scmp.lt.u32.totalorder %s449_s8, %s444_s5 }
  0x1b   : > { %p453_p10 = scmp.lt.u32.totalorder %s444_s5, %s671_s28 }
  0x1c   : > { %p448_p4 = pneg %p447_p3  ;;  %p452_p8 = por %p451_p7, %p450_p5 }
  0x1e   : > { %p454_p9 = por %p453_p10, %p452_p8 }
  0x20   : > { %p455_p0 = pnand %p454_p9, %p448_p4 }
  0x22   : > { %458 = shalt.err (!%p455_p0)
}
  0x23   : > { %s459_s17 = scalar_lea.vmem %s679_s30, 256  ;;  %s576_s19 = smov [#allocation2]  }
  0x24   : > { %p460_p1 = scmp.ne.s32.totalorder %s679_s30, %s459_s17  ;;  %s464_s25 = sshll.u32 %s576_s19, 4  ;;  %s465_s25 = int_to_ptr.vmem [resolvable:$false] %s464_s25 }
  0x25   : > { %s466_s26 = scalar_lea.vmem %s465_s25, 512  ;;  %p467_p11 = scmp.lt.s32.totalorder %s679_s30, %s465_s25 }
  0x26   : > { %p462_p3 = pnand %p460_p1, %p446_p2  ;;  %p468_p5 = scmp.lt.s32.totalorder %s466_s26, %s459_s17 }
  0x28   : > { %p463_p12 = pneg %p462_p3  ;;  %p469_p7 = por %p468_p5, %p467_p11 }
  0x2a   : > { %p470_p8 = pnand %p469_p7, %p463_p12 }
  0x2c   : > { %473 = shalt.err (!%p470_p8)
}
  0x2d   : > { %s577_s27 = smov 256   ;;  %s578_s29 = smov 128  }
  0x2e   : > { %s579_s5 = smov 8   ;;  %p153_p9 = scmp.lt.s32.totalorder %s574_s12, 3 }
  0x2f   : > { %388 = dma.hbm_to_vmem [thread:$0]  (!%p675_p13), %s671_s28, 256, %s679_s30, %s118_s4, %s577_s27, %s578_s29, %s579_s5  }
  0x30   : > { %s366_s6 = sshll.u32 %s662_s23, 3  ;;  %s717_s14 = scalar_lea.hbm %s825_s1, %s365_s24 }
  0x31   : > { %p834_p11 = scmp.ge.s32.totalorder %s574_s12, 1  ;;  %s141_s17 = scalar_lea.vmem [#allocation5], %s366_s6 }
  0x32   : > { %s148_s19 = sshll.u32 %s141_s17, 4  ;;  %s138_s28 = scalar_lea.sflag [#allocation6], %s662_s23  ;;  %s149_s19 = int_to_ptr.vmem [resolvable:$true] %s148_s19 }
  0x33   : > { %p721_p12 = pnand %p834_p11, %p153_p9  ;;  %s474_s30 = scalar_lea.hbm %s717_s14, 128 }
  0x34   : > { %p475_p0 = scmp.ne.s32.totalorder %s717_s14, %s474_s30  ;;  %s479_s25 = scalar_lea.hbm %s825_s1, 256 }
  0x35   : > { %s835_s16 = scalar_select %p721_p12, 1, 0 }
  0x36   : > { %p477_p4 = pnand %p475_p0, %p446_p2  ;;  %p480_p1 = scmp.lt.u32.totalorder %s717_s14, %s825_s1 }
  0x37   : > { %p481_p3 = scmp.lt.u32.totalorder %s479_s25, %s474_s30  ;;  %p483_p7 = scmp.lt.u32.totalorder %s474_s30, %s717_s14 }
  0x38   : > { %p478_p10 = pneg %p477_p4 }
  0x39   : > { %p482_p5 = por %p481_p3, %p480_p1 }
  0x3b   : > { %p484_p8 = por %p483_p7, %p482_p5 }
  0x3d   : > { %p485_p9 = pnand %p484_p8, %p478_p10 }
  0x3f   : > { %488 = shalt.err (!%p485_p9)
}
  0x40   : > { %s489_s23 = scalar_lea.vmem %s149_s19, 128  ;;  %s580_s29 = smov [#allocation5]  }
  0x41   : > { %p490_p11 = scmp.ne.s32.totalorder %s149_s19, %s489_s23  ;;  %s494_s5 = sshll.u32 %s580_s29, 4  ;;  %s495_s5 = int_to_ptr.vmem [resolvable:$false] %s494_s5 }
  0x42   : > { %s496_s6 = scalar_lea.vmem %s495_s5, 256  ;;  %p497_p6 = scmp.lt.s32.totalorder %s149_s19, %s495_s5 }
  0x43   : > { %p492_p0 = pnand %p490_p11, %p446_p2  ;;  %p498_p12 = scmp.lt.s32.totalorder %s496_s6, %s489_s23 }
  0x45   : > { %p493_p4 = pneg %p492_p0  ;;  %p499_p1 = por %p498_p12, %p497_p6 }
  0x47   : > { %p500_p3 = pnand %p499_p1, %p493_p4 }
  0x49   : > { %503 = shalt.err (!%p500_p3)
}
  0x4a   : > { %391 = dma.hbm_to_vmem [thread:$0]  (!%p675_p13), %s717_s14, 128, %s149_s19, %s138_s28  }
  0x4b   : > { %p836_p10 = scmp.ne.s32.totalorder %s835_s16, 0 }
  0x4c   : > { %s748_s7 = sand.u32 (!%p836_p10), 1, %s566_s10   ;;  %p837_p6 = scmp.ne.s32.totalorder (!%p836_p10), %s830_s20, 0 }
  0x4d   : > { %157 = sbr.rel (%p836_p10) target bundleno = 669 (0x29d), region = 28  ;;  %s369_s8 = sshll.u32 (!%p836_p10), %s748_s7, 4 }
  0x4e   : > { %s160_s17 = scalar_lea.sflag (!%p836_p10), [#allocation3], %s748_s7  ;;  %s163_s30 = scalar_lea.vmem (!%p836_p10), [#allocation2], %s369_s8 }
  0x54   : > { %549 = dma.done.wait (%p837_p6), %s160_s17, 256  }
  0x55   : > { %551 = vsyncadd (%p837_p6), %s160_s17, 4294967040  ;;  %s370_s3 = sshll.u32 %s748_s7, 3  ;;  %s169_s14 = scalar_lea.sflag [#allocation6], %s748_s7 }
  0x56   : > { %s760_s16 = scalar_lea.vmem [#allocation5], %s370_s3 }
  0x57   : > { %553 = dma.done.wait (%p837_p6), %s169_s14, 128  }
  0x58   : > { %555 = vsyncadd (%p837_p6), %s169_s14, 4294967168  ;;  %vm199_vm0 = vcmask 523264   ;;  %v198_v0 = vld [vmem:[%s163_s30] sm:$0xff]  ;;  %v372_v3 = vld [vmem:[%s163_s30 + $0x8] sm:$0xff]  ;;  %v581_v13 = vmov 0   ;;  %v582_v22 = vmov 1  }
  0x59   : > { %v200_v1 = vsel %vm199_vm0, %v198_v0, 0.0  ;;  %439 = vset.pattern.permute.xlu0 %v581_v13  ;;  %440 = vset.pattern.permute.xlu1 %v582_v22  ;;  %v225_v23 = vld [vmem:[%s760_s16] sm:$0xff]  ;;  %s583_s20 = smov 1   ;;  %s197_s19 = scalar_lea.vmem [#allocation7], %s369_s8 }
  0x5a   : > { %201 = vadd.xlane.f32.xlu0 %v200_v1  ;;  %s265_s28 = sshll.u32 %s197_s19, 4  ;;  %s376_s24 = sshll.u32 %s624_s13, 7  ;;  %s773_s28 = int_to_ptr.vmem [resolvable:$true] %s265_s28 }
  0x5b   : > { %s778_s26 = scalar_lea.hbm %s826_s2, %s376_s24  ;;  %s253_s13 = scalar_lea.sflag [#allocation4], %s748_s7 }
  0x5c   : > { %s504_s27 = scalar_lea.vmem %s773_s28, 256  ;;  %p838_p2 = scmp.ne.s32.totalorder %s831_s21, 0 }
  0x5d   : > { %p505_p13 = scmp.ne.s32.totalorder %s773_s28, %s504_s27  ;;  %s584_s23 = smov [#allocation7]  }
  0x5e   : > { %s508_s29 = sshll.u32 %s584_s23, 4  ;;  %s509_s29 = int_to_ptr.vmem [resolvable:$false] %s508_s29 }
  0x5f   : > { %p506_p12 = pnand %p505_p13, %p838_p2  ;;  %s510_s5 = scalar_lea.vmem %s509_s29, 512 }
  0x60   : > { %p511_p7 = scmp.lt.s32.totalorder %s773_s28, %s509_s29  ;;  %p512_p8 = scmp.lt.s32.totalorder %s510_s5, %s504_s27 }
  0x61   : > { %p507_p5 = pneg %p506_p12 }
  0x62   : > { %p513_p9 = por %p512_p8, %p511_p7 }
  0x64   : > { %p514_p11 = pnand %p513_p9, %p507_p5 }
  0xe7   : > { %v202_v2 = vpop.xlane.xlu0 %201 }
  0xe8   : > { %v203_v4 = vmul.f32 0.015625, %v202_v2 }
  0xea   : > { %v204_v5 = vsub.f32 %v198_v0, %v203_v4  ;;  %v208_v6 = vsub.f32 %v372_v3, %v203_v4 }
  0xec   : > { %v209_v7 = vadd.f32 %v208_v6, %v204_v5  ;;  %v205_v8 = vmul.f32 %v204_v5, %v204_v5  ;;  %v210_v9 = vmul.f32 %v208_v6, %v208_v6 }
  0xee   : > { %v212_v10 = vsel %vm199_vm0, %v209_v7, 0.0  ;;  %v211_v11 = vadd.f32 %v210_v9, %v205_v8 }
  0xef   : > { %213 = vadd.xlane.f32.xlu0 %v212_v10 }
  0xf0   : > { %v215_v12 = vsel %vm199_vm0, %v211_v11, 0.0 }
  0xf1   : > { %216 = vadd.xlane.f32.xlu1 %v215_v12 }
 0x17c   : > { %v214_v14 = vpop.xlane.xlu0 %213 }
 0x17d   : > { %v218_v15 = vmul.f32 0.0078125, %v214_v14 }
 0x17e   : > { %v217_v16 = vpop.xlane.xlu1 %216 }
 0x17f   : > { %v220_v17 = vmul.f32 %v218_v15, %v218_v15  ;;  %v219_v18 = vmul.f32 0.0078125, %v217_v16  ;;  %v227_v25 = vadd.f32 %v218_v15, %v203_v4 }
 0x181   : > { %v221_v19 = vsub.f32 %v219_v18, %v220_v17 }
 0x183   : > { %v222_v20 = vmax.f32 %v221_v19, 0.0 }
 0x185   : > { %v223_v21 = vadd.f32 1e-05, %v222_v20 }
 0x187   : > { %442 = vrsqrt.f32 %v223_v21 }
 0x191   : > { %v443_v24 = vpop.eup %442 }
 0x192   : > { %v226_v26 = vmul.f32 %v443_v24, %v225_v23 }
 0x194   : > { %236 = vperm.xlu0 %439, %v226_v26   ;;  %v228_v27 = vmul.f32 %v227_v25, %v226_v26 }
 0x196   : > { %230 = vrot.lane.b32.xlu1 %v228_v27, %s583_s20 }
 0x198   : > { %441 = vset.pattern.permute.xlu0 %v582_v22 }
 0x208   : > { %v231_v28 = vpop.permute.xlu1 %230 }
 0x209   : > { %v233_v29 = vsub.f32 %v225_v23, %v231_v28 }
 0x20b   : > { %241 = vperm.xlu1 %440, %v233_v29  }
 0x213   : > { %v237_v30 = vpop.permute.xlu0 %236 }
 0x214   : > { %v244_v31 = vmul.f32 %v237_v30, %v198_v0  ;;  %v248_v32 = vmul.f32 %v372_v3, %v237_v30 }
 0x28a   : > { %v242_v33 = vpop.permute.xlu1 %241 }
 0x28b   : > { %v245_v34 = vadd.f32 %v244_v31, %v242_v33  ;;  %v249_v35 = vadd.f32 %v248_v32, %v242_v33 }
 0x28d   : > { %246 = vst.msk [vmem:[%s197_s19] sm:$0xff] %vm199_vm0, %v245_v34  ;;  %374 = vst.msk [vmem:[%s197_s19 + $0x8] sm:$0xff] %vm199_vm0, %v249_v35 }
 0x28e   : > { %517 = shalt.err (!%p514_p11)
}
 0x28f   : > { %s518_s6 = scalar_lea.hbm %s778_s26, 256  ;;  %s522_s30 = scalar_lea.hbm %s826_s2, 512 }
 0x290   : > { %p519_p0 = scmp.ne.s32.totalorder %s778_s26, %s518_s6  ;;  %p523_p3 = scmp.lt.u32.totalorder %s778_s26, %s826_s2 }
 0x291   : > { %p524_p10 = scmp.lt.u32.totalorder %s522_s30, %s518_s6  ;;  %p526_p13 = scmp.lt.u32.totalorder %s518_s6, %s778_s26 }
 0x292   : > { %p520_p4 = pnand %p519_p0, %p838_p2 }
 0x293   : > { %p525_p6 = por %p524_p10, %p523_p3 }
 0x294   : > { %p521_p1 = pneg %p520_p4 }
 0x295   : > { %p527_p12 = por %p526_p13, %p525_p6 }
 0x297   : > { %p528_p5 = pnand %p527_p12, %p521_p1 }
 0x299   : > { %531 = shalt.err (!%p528_p5)
}
 0x29a   : > { %s585_s16 = smov 128   ;;  %s586_s20 = smov 256  }
 0x29b   : > { %s587_s19 = smov 8  }
 0x29c   : > { %383 = dma.vmem_to_hbm [thread:$0]  (%p838_p2), %s773_s28, 256, %s778_s26, %s253_s13, %s585_s16, %s586_s20, %s587_s19  }
 0x29d PF: > { %s280_s24 = sand.u32 1, %s562_s9   ;;  %p839_p7 = scmp.ne.s32.totalorder %s832_s22, 0 }
 0x29e   : > { %p840_p8 = scmp.ge.s32.totalorder %s574_s12, 2  ;;  %s281_s4 = scalar_lea.sflag [#allocation4], %s280_s24 }
 0x2a0   : > { %p393_p9 = pnand %p840_p8, %p839_p7 }
 0x2a2   : > { %557 = dma.done.wait (!%p393_p9), %s281_s4, 256  }
 0x2a3   : > { %559 = vsyncadd (!%p393_p9), %s281_s4, 4294967040  ;;  %p18_p11 = scmp.ge.s32.totalorder %s628_s15, 4   ;;  %s841_s9 = smov %s566_s10 }
 0x2a4   : > { %s842_s10 = smov %s570_s11  ;;  %s843_s11 = smov %s640_s18 }
 0x2a5   : > { %s844_s12 = smov %s628_s15  ;;  %20 = sbr.rel (!%p18_p11) target bundleno = 7 (0x7), region = 88 }
 0x2ac   :  { %286 = vsyncpa [#allocation3], 1 }
 0x2ad   :  { %288 = vsyncpa [#allocation3 + $0x1], 1 }
 0x2ae   :  { %289 = vsyncpa [#allocation6], 1 }
 0x2af   :  { %291 = vsyncpa [#allocation6 + $0x1], 1 }
 0x2b0   :  { %292 = vsyncpa [#allocation4], 1 }
 0x2b1   :  { %294 = vsyncpa [#allocation4 + $0x1], 1 }

</bundles_post_ra>
